<compile_context>
chip_gen: v7x
topology: tpu7x:2x2x1
jax: 0.10.0
libtpu: 0.0.40
codegen_flags: <defaults>
</compile_context>

<pallas_src>
import jax
import jax.numpy as jnp
from jax.experimental import pallas as pl
from jax.experimental.pallas import tpu as pltpu


def _conv1x1_kernel(w_ref, b_ref, x_ref, o_ref):
    """Per-tile 1x1 conv: o[co, :] = sum_ci w[co, ci] * x[ci, :] + b[co].

    w_ref: SMEM (Cout, Cin)   b_ref: SMEM (Cout,)
    x_ref: VMEM (Cin, T)      o_ref: VMEM (Cout, T)   (T = spatial tile, lane dim)
    """
    cin = x_ref.shape[0]
    cout = o_ref.shape[0]
    for co in range(cout):                        # static unroll; Cout is small
        # Broadcast scalar-weight FMAs on the VPU, full lane occupancy.
        acc = x_ref[0:1, :].astype(jnp.float32) * w_ref[co, 0]
        for ci in range(1, cin):
            acc = acc + x_ref[ci:ci + 1, :].astype(jnp.float32) * w_ref[co, ci]
        acc = acc + b_ref[co]
        o_ref[co:co + 1, :] = acc.astype(o_ref.dtype)


def _pick_spatial_tile(hw, target=2048):
    """Largest multiple-of-128 tile <= target that divides hw (else hw itself)."""
    if hw <= target or hw % 128 != 0:
        return hw
    t = (min(target, hw) // 128) * 128
    while t >= 128:
        if hw % t == 0:
            return t
        t -= 128
    return hw


def conv_block_final(x_nchw, weight, bias):
    """1x1 conv with bias, PyTorch Conv2d semantics (NCHW in, NCHW out).

    x_nchw : (N, Cin, H, W)
    weight : (Cout, Cin, 1, 1)   (PyTorch conv weight shape)
    bias   : (Cout,)
    """
    N, Cin, H, W = x_nchw.shape
    Cout = weight.shape[0]
    HW = H * W

    x3 = x_nchw.reshape(N, Cin, HW)                 # free view; spatial stays lane-dense
    w_mat = weight.reshape(Cout, Cin).astype(jnp.float32)
    b_vec = bias.reshape(Cout).astype(jnp.float32)

    T = _pick_spatial_tile(HW)
    n_tiles = HW // T

    out3 = pl.pallas_call(
        _conv1x1_kernel,
        out_shape=jax.ShapeDtypeStruct((N, Cout, HW), x_nchw.dtype),
        grid_spec=pl.GridSpec(
            grid=(N, n_tiles),
            in_specs=[
                pl.BlockSpec(memory_space=pltpu.MemorySpace.SMEM),      # weight (resident)
                pl.BlockSpec(memory_space=pltpu.MemorySpace.SMEM),      # bias   (resident)
                pl.BlockSpec((None, Cin, T), lambda n, t: (n, 0, t)),   # x tile
            ],
            out_specs=pl.BlockSpec((None, Cout, T), lambda n, t: (n, 0, t)),
        ),
        compiler_params=pltpu.CompilerParams(
            dimension_semantics=("parallel", "parallel")),
    )(w_mat, b_vec, x3)

    return out3.reshape(N, Cout, H, W)


if __name__ == "__main__":
    key = jax.random.PRNGKey(0)
    kx, kw, kb = jax.random.split(key, 3)

    N, Cin, Cout, Hs, Ws = 2, 4, 4, 16, 16

    x = jax.random.normal(kx, (N, Cin, Hs, Ws), dtype=jnp.float32)
    # Deterministic synthetic params matching nn.Conv2d(in, out, kernel_size=1) shapes.
    weight = jax.random.normal(kw, (Cout, Cin, 1, 1), dtype=jnp.float32) * 0.1
    bias = jax.random.normal(kb, (Cout,), dtype=jnp.float32) * 0.1

    out = conv_block_final(x, weight, bias)
    out = jax.block_until_ready(out)

    # Reference check in plain JAX (1x1 conv == channel contraction).
    ref = (jnp.einsum("nchw,oc->nohw", x, weight.reshape(Cout, Cin))
           + bias[None, :, None, None])
    assert out.shape == (N, Cout, Hs, Ws)
    assert jnp.allclose(out, ref, atol=1e-5, rtol=1e-5)

    print("KERNEL_OK")
</pallas_src>

<mosaic_0001>
module attributes {stable_mosaic.version = 11 : i64} {
  func.func @_conv1x1_kernel(%arg0: i32, %arg1: i32, %arg2: memref<4x4xf32, #tpu.memory_space<smem>>, %arg3: memref<4xf32, #tpu.memory_space<smem>>, %arg4: memref<1x4x256xf32, #tpu.memory_space<vmem>>, %arg5: memref<1x4x256xf32, #tpu.memory_space<vmem>>) attributes {dimension_semantics = [#tpu.dimension_semantics<parallel>, #tpu.dimension_semantics<parallel>], iteration_bounds = array<i64: 2, 1>, scalar_prefetch = 0 : i64, scratch_operands = 0 : i64, tpu.core_type = #tpu.core_type<tc>, window_params = [{transform_indices = @transform_0, window_bounds = array<i64: 4, 4>}, {transform_indices = @transform_1, window_bounds = array<i64: 4>}, {transform_indices = @transform_2, window_bounds = array<i64: 1, 4, 256>}, {transform_indices = @transform_3, window_bounds = array<i64: 1, 4, 256>}]} {
    %c0 = arith.constant 0 : index
    %c0_0 = arith.constant 0 : index
    %c0_1 = arith.constant 0 : index
    %0 = vector.load %arg4[%c0, %c0_0, %c0_1] : memref<1x4x256xf32, #tpu.memory_space<vmem>>, vector<1x1x256xf32>
    %1 = vector.shape_cast %0 : vector<1x1x256xf32> to vector<1x256xf32>
    %c0_2 = arith.constant 0 : index
    %c0_3 = arith.constant 0 : index
    %2 = memref.load %arg2[%c0_2, %c0_3] : memref<4x4xf32, #tpu.memory_space<smem>>
    %3 = vector.broadcast %2 : f32 to vector<1x256xf32>
    %4 = arith.mulf %1, %3 : vector<1x256xf32>
    %c0_4 = arith.constant 0 : index
    %c1 = arith.constant 1 : index
    %c0_5 = arith.constant 0 : index
    %5 = vector.load %arg4[%c0_4, %c1, %c0_5] : memref<1x4x256xf32, #tpu.memory_space<vmem>>, vector<1x1x256xf32>
    %6 = vector.shape_cast %5 : vector<1x1x256xf32> to vector<1x256xf32>
    %c0_6 = arith.constant 0 : index
    %c1_7 = arith.constant 1 : index
    %7 = memref.load %arg2[%c0_6, %c1_7] : memref<4x4xf32, #tpu.memory_space<smem>>
    %8 = vector.broadcast %7 : f32 to vector<1x256xf32>
    %9 = arith.mulf %6, %8 : vector<1x256xf32>
    %10 = arith.addf %4, %9 : vector<1x256xf32>
    %c0_8 = arith.constant 0 : index
    %c2 = arith.constant 2 : index
    %c0_9 = arith.constant 0 : index
    %11 = vector.load %arg4[%c0_8, %c2, %c0_9] : memref<1x4x256xf32, #tpu.memory_space<vmem>>, vector<1x1x256xf32>
    %12 = vector.shape_cast %11 : vector<1x1x256xf32> to vector<1x256xf32>
    %c0_10 = arith.constant 0 : index
    %c2_11 = arith.constant 2 : index
    %13 = memref.load %arg2[%c0_10, %c2_11] : memref<4x4xf32, #tpu.memory_space<smem>>
    %14 = vector.broadcast %13 : f32 to vector<1x256xf32>
    %15 = arith.mulf %12, %14 : vector<1x256xf32>
    %16 = arith.addf %10, %15 : vector<1x256xf32>
    %c0_12 = arith.constant 0 : index
    %c3 = arith.constant 3 : index
    %c0_13 = arith.constant 0 : index
    %17 = vector.load %arg4[%c0_12, %c3, %c0_13] : memref<1x4x256xf32, #tpu.memory_space<vmem>>, vector<1x1x256xf32>
    %18 = vector.shape_cast %17 : vector<1x1x256xf32> to vector<1x256xf32>
    %c0_14 = arith.constant 0 : index
    %c3_15 = arith.constant 3 : index
    %19 = memref.load %arg2[%c0_14, %c3_15] : memref<4x4xf32, #tpu.memory_space<smem>>
    %20 = vector.broadcast %19 : f32 to vector<1x256xf32>
    %21 = arith.mulf %18, %20 : vector<1x256xf32>
    %22 = arith.addf %16, %21 : vector<1x256xf32>
    %c0_16 = arith.constant 0 : index
    %23 = memref.load %arg3[%c0_16] : memref<4xf32, #tpu.memory_space<smem>>
    %24 = vector.broadcast %23 : f32 to vector<1x256xf32>
    %25 = arith.addf %22, %24 : vector<1x256xf32>
    %c0_17 = arith.constant 0 : index
    %c0_18 = arith.constant 0 : index
    %c0_19 = arith.constant 0 : index
    %26 = vector.load %arg5[%c0_17, %c0_18, %c0_19] : memref<1x4x256xf32, #tpu.memory_space<vmem>>, vector<1x1x256xf32>
    %27 = vector.shape_cast %26 : vector<1x1x256xf32> to vector<1x256xf32>
    %28 = vector.shape_cast %25 : vector<1x256xf32> to vector<1x1x256xf32>
    tpu.vector_store %arg5[%c0_17, %c0_18, %c0_19], %28 {strides = array<i32>} : memref<1x4x256xf32, #tpu.memory_space<vmem>>, vector<1x1x256xf32>,
    %c0_20 = arith.constant 0 : index
    %c0_21 = arith.constant 0 : index
    %c0_22 = arith.constant 0 : index
    %29 = vector.load %arg4[%c0_20, %c0_21, %c0_22] : memref<1x4x256xf32, #tpu.memory_space<vmem>>, vector<1x1x256xf32>
    %30 = vector.shape_cast %29 : vector<1x1x256xf32> to vector<1x256xf32>
    %c1_23 = arith.constant 1 : index
    %c0_24 = arith.constant 0 : index
    %31 = memref.load %arg2[%c1_23, %c0_24] : memref<4x4xf32, #tpu.memory_space<smem>>
    %32 = vector.broadcast %31 : f32 to vector<1x256xf32>
    %33 = arith.mulf %30, %32 : vector<1x256xf32>
    %c0_25 = arith.constant 0 : index
    %c1_26 = arith.constant 1 : index
    %c0_27 = arith.constant 0 : index
    %34 = vector.load %arg4[%c0_25, %c1_26, %c0_27] : memref<1x4x256xf32, #tpu.memory_space<vmem>>, vector<1x1x256xf32>
    %35 = vector.shape_cast %34 : vector<1x1x256xf32> to vector<1x256xf32>
    %c1_28 = arith.constant 1 : index
    %c1_29 = arith.constant 1 : index
    %36 = memref.load %arg2[%c1_28, %c1_29] : memref<4x4xf32, #tpu.memory_space<smem>>
    %37 = vector.broadcast %36 : f32 to vector<1x256xf32>
    %38 = arith.mulf %35, %37 : vector<1x256xf32>
    %39 = arith.addf %33, %38 : vector<1x256xf32>
    %c0_30 = arith.constant 0 : index
    %c2_31 = arith.constant 2 : index
    %c0_32 = arith.constant 0 : index
    %40 = vector.load %arg4[%c0_30, %c2_31, %c0_32] : memref<1x4x256xf32, #tpu.memory_space<vmem>>, vector<1x1x256xf32>
    %41 = vector.shape_cast %40 : vector<1x1x256xf32> to vector<1x256xf32>
    %c1_33 = arith.constant 1 : index
    %c2_34 = arith.constant 2 : index
    %42 = memref.load %arg2[%c1_33, %c2_34] : memref<4x4xf32, #tpu.memory_space<smem>>
    %43 = vector.broadcast %42 : f32 to vector<1x256xf32>
    %44 = arith.mulf %41, %43 : vector<1x256xf32>
    %45 = arith.addf %39, %44 : vector<1x256xf32>
    %c0_35 = arith.constant 0 : index
    %c3_36 = arith.constant 3 : index
    %c0_37 = arith.constant 0 : index
    %46 = vector.load %arg4[%c0_35, %c3_36, %c0_37] : memref<1x4x256xf32, #tpu.memory_space<vmem>>, vector<1x1x256xf32>
    %47 = vector.shape_cast %46 : vector<1x1x256xf32> to vector<1x256xf32>
    %c1_38 = arith.constant 1 : index
    %c3_39 = arith.constant 3 : index
    %48 = memref.load %arg2[%c1_38, %c3_39] : memref<4x4xf32, #tpu.memory_space<smem>>
    %49 = vector.broadcast %48 : f32 to vector<1x256xf32>
    %50 = arith.mulf %47, %49 : vector<1x256xf32>
    %51 = arith.addf %45, %50 : vector<1x256xf32>
    %c1_40 = arith.constant 1 : index
    %52 = memref.load %arg3[%c1_40] : memref<4xf32, #tpu.memory_space<smem>>
    %53 = vector.broadcast %52 : f32 to vector<1x256xf32>
    %54 = arith.addf %51, %53 : vector<1x256xf32>
    %c0_41 = arith.constant 0 : index
    %c1_42 = arith.constant 1 : index
    %c0_43 = arith.constant 0 : index
    %55 = vector.load %arg5[%c0_41, %c1_42, %c0_43] : memref<1x4x256xf32, #tpu.memory_space<vmem>>, vector<1x1x256xf32>
    %56 = vector.shape_cast %55 : vector<1x1x256xf32> to vector<1x256xf32>
    %57 = vector.shape_cast %54 : vector<1x256xf32> to vector<1x1x256xf32>
    tpu.vector_store %arg5[%c0_41, %c1_42, %c0_43], %57 {strides = array<i32>} : memref<1x4x256xf32, #tpu.memory_space<vmem>>, vector<1x1x256xf32>,
    %c0_44 = arith.constant 0 : index
    %c0_45 = arith.constant 0 : index
    %c0_46 = arith.constant 0 : index
    %58 = vector.load %arg4[%c0_44, %c0_45, %c0_46] : memref<1x4x256xf32, #tpu.memory_space<vmem>>, vector<1x1x256xf32>
    %59 = vector.shape_cast %58 : vector<1x1x256xf32> to vector<1x256xf32>
    %c2_47 = arith.constant 2 : index
    %c0_48 = arith.constant 0 : index
    %60 = memref.load %arg2[%c2_47, %c0_48] : memref<4x4xf32, #tpu.memory_space<smem>>
    %61 = vector.broadcast %60 : f32 to vector<1x256xf32>
    %62 = arith.mulf %59, %61 : vector<1x256xf32>
    %c0_49 = arith.constant 0 : index
    %c1_50 = arith.constant 1 : index
    %c0_51 = arith.constant 0 : index
    %63 = vector.load %arg4[%c0_49, %c1_50, %c0_51] : memref<1x4x256xf32, #tpu.memory_space<vmem>>, vector<1x1x256xf32>
    %64 = vector.shape_cast %63 : vector<1x1x256xf32> to vector<1x256xf32>
    %c2_52 = arith.constant 2 : index
    %c1_53 = arith.constant 1 : index
    %65 = memref.load %arg2[%c2_52, %c1_53] : memref<4x4xf32, #tpu.memory_space<smem>>
    %66 = vector.broadcast %65 : f32 to vector<1x256xf32>
    %67 = arith.mulf %64, %66 : vector<1x256xf32>
    %68 = arith.addf %62, %67 : vector<1x256xf32>
    %c0_54 = arith.constant 0 : index
    %c2_55 = arith.constant 2 : index
    %c0_56 = arith.constant 0 : index
    %69 = vector.load %arg4[%c0_54, %c2_55, %c0_56] : memref<1x4x256xf32, #tpu.memory_space<vmem>>, vector<1x1x256xf32>
    %70 = vector.shape_cast %69 : vector<1x1x256xf32> to vector<1x256xf32>
    %c2_57 = arith.constant 2 : index
    %c2_58 = arith.constant 2 : index
    %71 = memref.load %arg2[%c2_57, %c2_58] : memref<4x4xf32, #tpu.memory_space<smem>>
    %72 = vector.broadcast %71 : f32 to vector<1x256xf32>
    %73 = arith.mulf %70, %72 : vector<1x256xf32>
    %74 = arith.addf %68, %73 : vector<1x256xf32>
    %c0_59 = arith.constant 0 : index
    %c3_60 = arith.constant 3 : index
    %c0_61 = arith.constant 0 : index
    %75 = vector.load %arg4[%c0_59, %c3_60, %c0_61] : memref<1x4x256xf32, #tpu.memory_space<vmem>>, vector<1x1x256xf32>
    %76 = vector.shape_cast %75 : vector<1x1x256xf32> to vector<1x256xf32>
    %c2_62 = arith.constant 2 : index
    %c3_63 = arith.constant 3 : index
    %77 = memref.load %arg2[%c2_62, %c3_63] : memref<4x4xf32, #tpu.memory_space<smem>>
    %78 = vector.broadcast %77 : f32 to vector<1x256xf32>
    %79 = arith.mulf %76, %78 : vector<1x256xf32>
    %80 = arith.addf %74, %79 : vector<1x256xf32>
    %c2_64 = arith.constant 2 : index
    %81 = memref.load %arg3[%c2_64] : memref<4xf32, #tpu.memory_space<smem>>
    %82 = vector.broadcast %81 : f32 to vector<1x256xf32>
    %83 = arith.addf %80, %82 : vector<1x256xf32>
    %c0_65 = arith.constant 0 : index
    %c2_66 = arith.constant 2 : index
    %c0_67 = arith.constant 0 : index
    %84 = vector.load %arg5[%c0_65, %c2_66, %c0_67] : memref<1x4x256xf32, #tpu.memory_space<vmem>>, vector<1x1x256xf32>
    %85 = vector.shape_cast %84 : vector<1x1x256xf32> to vector<1x256xf32>
    %86 = vector.shape_cast %83 : vector<1x256xf32> to vector<1x1x256xf32>
    tpu.vector_store %arg5[%c0_65, %c2_66, %c0_67], %86 {strides = array<i32>} : memref<1x4x256xf32, #tpu.memory_space<vmem>>, vector<1x1x256xf32>,
    %c0_68 = arith.constant 0 : index
    %c0_69 = arith.constant 0 : index
    %c0_70 = arith.constant 0 : index
    %87 = vector.load %arg4[%c0_68, %c0_69, %c0_70] : memref<1x4x256xf32, #tpu.memory_space<vmem>>, vector<1x1x256xf32>
    %88 = vector.shape_cast %87 : vector<1x1x256xf32> to vector<1x256xf32>
    %c3_71 = arith.constant 3 : index
    %c0_72 = arith.constant 0 : index
    %89 = memref.load %arg2[%c3_71, %c0_72] : memref<4x4xf32, #tpu.memory_space<smem>>
    %90 = vector.broadcast %89 : f32 to vector<1x256xf32>
    %91 = arith.mulf %88, %90 : vector<1x256xf32>
    %c0_73 = arith.constant 0 : index
    %c1_74 = arith.constant 1 : index
    %c0_75 = arith.constant 0 : index
    %92 = vector.load %arg4[%c0_73, %c1_74, %c0_75] : memref<1x4x256xf32, #tpu.memory_space<vmem>>, vector<1x1x256xf32>
    %93 = vector.shape_cast %92 : vector<1x1x256xf32> to vector<1x256xf32>
    %c3_76 = arith.constant 3 : index
    %c1_77 = arith.constant 1 : index
    %94 = memref.load %arg2[%c3_76, %c1_77] : memref<4x4xf32, #tpu.memory_space<smem>>
    %95 = vector.broadcast %94 : f32 to vector<1x256xf32>
    %96 = arith.mulf %93, %95 : vector<1x256xf32>
    %97 = arith.addf %91, %96 : vector<1x256xf32>
    %c0_78 = arith.constant 0 : index
    %c2_79 = arith.constant 2 : index
    %c0_80 = arith.constant 0 : index
    %98 = vector.load %arg4[%c0_78, %c2_79, %c0_80] : memref<1x4x256xf32, #tpu.memory_space<vmem>>, vector<1x1x256xf32>
    %99 = vector.shape_cast %98 : vector<1x1x256xf32> to vector<1x256xf32>
    %c3_81 = arith.constant 3 : index
    %c2_82 = arith.constant 2 : index
    %100 = memref.load %arg2[%c3_81, %c2_82] : memref<4x4xf32, #tpu.memory_space<smem>>
    %101 = vector.broadcast %100 : f32 to vector<1x256xf32>
    %102 = arith.mulf %99, %101 : vector<1x256xf32>
    %103 = arith.addf %97, %102 : vector<1x256xf32>
    %c0_83 = arith.constant 0 : index
    %c3_84 = arith.constant 3 : index
    %c0_85 = arith.constant 0 : index
    %104 = vector.load %arg4[%c0_83, %c3_84, %c0_85] : memref<1x4x256xf32, #tpu.memory_space<vmem>>, vector<1x1x256xf32>
    %105 = vector.shape_cast %104 : vector<1x1x256xf32> to vector<1x256xf32>
    %c3_86 = arith.constant 3 : index
    %c3_87 = arith.constant 3 : index
    %106 = memref.load %arg2[%c3_86, %c3_87] : memref<4x4xf32, #tpu.memory_space<smem>>
    %107 = vector.broadcast %106 : f32 to vector<1x256xf32>
    %108 = arith.mulf %105, %107 : vector<1x256xf32>
    %109 = arith.addf %103, %108 : vector<1x256xf32>
    %c3_88 = arith.constant 3 : index
    %110 = memref.load %arg3[%c3_88] : memref<4xf32, #tpu.memory_space<smem>>
    %111 = vector.broadcast %110 : f32 to vector<1x256xf32>
    %112 = arith.addf %109, %111 : vector<1x256xf32>
    %c0_89 = arith.constant 0 : index
    %c3_90 = arith.constant 3 : index
    %c0_91 = arith.constant 0 : index
    %113 = vector.load %arg5[%c0_89, %c3_90, %c0_91] : memref<1x4x256xf32, #tpu.memory_space<vmem>>, vector<1x1x256xf32>
    %114 = vector.shape_cast %113 : vector<1x1x256xf32> to vector<1x256xf32>
    %115 = vector.shape_cast %112 : vector<1x256xf32> to vector<1x1x256xf32>
    tpu.vector_store %arg5[%c0_89, %c3_90, %c0_91], %115 {strides = array<i32>} : memref<1x4x256xf32, #tpu.memory_space<vmem>>, vector<1x1x256xf32>,
    return
  }
  func.func @transform_0(%arg0: i32, %arg1: i32) -> (i32, i32) {
    %c0_i32 = arith.constant 0 : i32
    %c0_i32_0 = arith.constant 0 : i32
    %c0_i32_1 = arith.constant 0 : i32
    return %c0_i32, %c0_i32_0 : i32, i32
  }
  func.func @transform_1(%arg0: i32, %arg1: i32) -> i32 {
    %c0_i32 = arith.constant 0 : i32
    %c0_i32_0 = arith.constant 0 : i32
    return %c0_i32 : i32
  }
  func.func @transform_2(%arg0: i32, %arg1: i32) -> (i32, i32, i32) {
    %c0_i32 = arith.constant 0 : i32
    %c0_i32_0 = arith.constant 0 : i32
    return %arg0, %c0_i32, %arg1 : i32, i32, i32
  }
  func.func @transform_3(%arg0: i32, %arg1: i32) -> (i32, i32, i32) {
    %c0_i32 = arith.constant 0 : i32
    %c0_i32_0 = arith.constant 0 : i32
    return %arg0, %c0_i32, %arg1 : i32, i32, i32
  }
}

</mosaic_0001>

<bundles_post_ra>
// kernel: tpu_custom_call.1
= control target key start
LH: loop header
LB: loop body
LE: loop exit
PB: predicated region body
PF: predicated region fallthrough
CT: control target
= control target key end

     0   :  { %8 = vsyncpa [#allocation5], 0  ;;  %s1058_s0 = inlined_call_operand.hbm [shape: f32[4,4], index: 0, kind: input, shape index: {}]   ;;  %s1059_s1 = inlined_call_operand.vmem [shape: f32[4], index: 1, kind: input, shape index: {}]   ;;  %s1060_s2 = inlined_call_operand.hbm [shape: f32[2,4,256], index: 2, kind: input, shape index: {}]   ;;  %s1061_s3 = inlined_call_operand.hbm [shape: f32[2,4,256], index: 3, kind: output, shape index: {}]  }
   0x1   :  { %9 = vsyncpa [#allocation6], 0 }
   0x2   :  { %10 = vsyncpa [#allocation3], 0 }
   0x3   :  { %12 = vsyncpa [#allocation3 + $0x1], 0 }
   0x4   :  { %13 = vsyncpa [#allocation4], 0 }
   0x5   :  { %15 = vsyncpa [#allocation4 + $0x1], 0  ;;  %s770_s12 = smov 0   ;;  %s772_s13 = smov 0  }
   0x6   :  { %s774_s14 = smov 0   ;;  %s776_s15 = smov 0  }
   0x7   :  { %s778_s16 = smov 0   ;;  %s780_s17 = smov 0  }
   0x8 LB: > { %s459_s18 = sadd.s32 4294967295, %s744_s17   ;;  %s460_s19 = sadd.s32 4294967294, %s744_s17   ;;  %s744_s17 = sphi %s780_s17, %s21_s17   ;;  %s740_s16 = sphi %s778_s16, %s1086_s16   ;;  %s736_s15 = sphi %s776_s15, %s1085_s15   ;;  %s732_s14 = sphi %s774_s14, %s1084_s14   ;;  %s728_s13 = sphi %s772_s13, %s1083_s13   ;;  %s724_s12 = sphi %s770_s12, %s1082_s12  }
   0x9   : > { %p97_p0 = scmp.ne.s32.totalorder %s728_s13, %s724_s12  ;;  %p804_p1 = scmp.eq.s32.totalorder %s459_s18, 0 }
   0xa   : > { %p808_p2 = scmp.eq.s32.totalorder %s459_s18, 1  ;;  %p129_p3 = scmp.eq.s32.totalorder %s460_s19, 1 }
   0xb   : > { %s1066_s20 = scalar_select %p804_p1, 1, 0 }
   0xc   : > { %p814_p4 = por %p804_p1, %p97_p0  ;;  %p461_p5 = scmp.ge.s32.totalorder %s744_s17, 1 }
   0xd   : > { %p819_p6 = por %p129_p3, %p97_p0  ;;  %p136_p7 = scmp.lt.s32.totalorder %s744_s17, 3 }
   0xe   : > { %s1068_s22 = scalar_select %p814_p4, 1, 0 }
   0xf   : > { %s1069_s23 = scalar_select %p819_p6, 1, 0 }
  0x10   : > { %p824_p8 = pnand %p461_p5, %p136_p7  ;;  %s158_s27 = sshll.u32 %s1059_s1, 4  ;;  %s159_s27 = int_to_ptr.vmem [resolvable:$true] %s158_s27 }
  0x11   : > { %s33_s29 = sadd.s32 1, %s740_s16  ;;  %s596_s6 = scalar_lea.hbm %s1058_s0, 64 }
  0x12   : > { %s1070_s24 = scalar_select %p824_p8, 1, 0 }
  0x13   : > { %p525_p10 = pneg %p824_p8  ;;  %p841_p12 = scmp.ge.s32.totalorder %s33_s29, 2 }
  0x14   : > { %p597_p13 = scmp.ne.s32.totalorder %s1058_s0, %s596_s6  ;;  %p603_p7 = scmp.lt.u32.totalorder %s596_s6, %s1058_s0 }
  0x15   : > { %p836_p11 = pnand %p525_p10, %p804_p1 }
  0x17   : > { %p598_p0 = pneg %p836_p11 }
  0x19   : > { %p599_p3 = pnand %p598_p0, %p597_p13 }
  0x1b   : > { %p600_p5 = pneg %p599_p3 }
  0x1d   : > { %p605_p10 = pnand %p603_p7, %p600_p5 }
  0x1f   : > { %608 = shalt.err (!%p605_p10)
}
  0x20   : > { %s746_s11 = smov [#allocation2]   ;;  %s609_s25 = scalar_lea.vmem %s159_s27, 16 }
  0x21   : > { %528 = dma.hbm_to_smem (!%p836_p11), %s1058_s0, 64, %s746_s11, [#allocation5]  }
  0x22   : > { %p610_p9 = scmp.ne.s32.totalorder %s159_s27, %s609_s25  ;;  %p617_p1 = scmp.lt.s32.totalorder %s159_s27, %s159_s27 }
  0x23   : > { %p618_p13 = scmp.lt.s32.totalorder %s609_s25, %s609_s25 }
  0x24   : > { %p612_p6 = pnand %p610_p9, %p598_p0 }
  0x25   : > { %p619_p3 = por %p618_p13, %p617_p1 }
  0x26   : > { %p613_p4 = pneg %p612_p6 }
  0x28   : > { %p620_p8 = pnand %p619_p3, %p613_p4 }
  0x2a   : > { %623 = shalt.err (!%p620_p8)
}
  0x2b   : > { %s747_s26 = smov [#allocation7]   ;;  %s1088_s29 = smov (%p841_p12, %s33_s29), 0 }
  0x2c   : > { %531 = dma.vmem_to_smem (!%p836_p11), %s159_s27, 16, %s747_s26, [#allocation6]  }
  0x2d   : > { %s84_s4 = sadd.s32 1, %s732_s14  ;;  %p91_p1 = scmp.ne.s32.totalorder %s732_s14, %s728_s13 }
  0x2e   : > { %s79_s5 = ssub.s32 %s740_s16, %s1088_s29  ;;  %p92_p4 = scmp.eq.s32.totalorder %s744_s17, 0 }
  0x2f   : > { %p82_p6 = scmp.eq.s32.totalorder %s79_s5, 0  ;;  %p875_p8 = por %p808_p2, %p91_p1 }
  0x30   : > { %p93_p9 = por %p92_p4, %p91_p1  ;;  %p542_p0 = scmp.lt.s32.totalorder %s744_s17, 2 }
  0x31   : > { %s881_s6 = scalar_select %p82_p6, %s732_s14, %s84_s4  }
  0x32   : > { %s169_s7 = sand.u32 1, %s732_s14   ;;  %s511_s27 = sshll.u32 %s740_s16, 7 }
  0x33   : > { %s465_s30 = sshll.u32 %s169_s7, 3  ;;  %s888_s10 = scalar_lea.hbm %s1060_s2, %s511_s27 }
  0x34   : > { %s173_s21 = scalar_lea.vmem [#allocation8], %s465_s30  ;;  %p890_p2 = pnand %p542_p0, %p93_p9 }
  0x35   : > { %s183_s11 = sshll.u32 %s173_s21, 4  ;;  %s170_s19 = scalar_lea.sflag [#allocation3], %s169_s7  ;;  %s894_s11 = int_to_ptr.vmem [resolvable:$true] %s183_s11 }
  0x36   : > { %s624_s25 = scalar_lea.hbm %s888_s10, 128  ;;  %p626_p12 = pneg %p890_p2 }
  0x37   : > { %p625_p11 = scmp.ne.s32.totalorder %s888_s10, %s624_s25  ;;  %s629_s5 = scalar_lea.hbm %s1060_s2, 256 }
  0x38   : > { %p630_p10 = scmp.lt.u32.totalorder %s888_s10, %s1060_s2  ;;  %p631_p13 = scmp.lt.u32.totalorder %s629_s5, %s624_s25 }
  0x39   : > { %p627_p5 = pnand %p626_p12, %p625_p11  ;;  %p633_p1 = scmp.lt.u32.totalorder %s624_s25, %s888_s10 }
  0x3a   : > { %p632_p3 = por %p631_p13, %p630_p10 }
  0x3b   : > { %p628_p7 = pneg %p627_p5 }
  0x3c   : > { %p634_p4 = por %p633_p1, %p632_p3 }
  0x3e   : > { %p635_p6 = pnand %p634_p4, %p628_p7 }
  0x40   : > { %638 = shalt.err (!%p635_p6)
}
  0x41   : > { %s639_s7 = scalar_lea.vmem %s894_s11, 128  ;;  %s748_s8 = smov [#allocation8]  }
  0x42   : > { %p640_p9 = scmp.ne.s32.totalorder %s894_s11, %s639_s7  ;;  %s644_s9 = sshll.u32 %s748_s8, 4  ;;  %s645_s9 = int_to_ptr.vmem [resolvable:$false] %s644_s9 }
  0x43   : > { %s646_s21 = scalar_lea.vmem %s645_s9, 256  ;;  %p647_p5 = scmp.lt.s32.totalorder %s894_s11, %s645_s9 }
  0x44   : > { %p642_p0 = pnand %p640_p9, %p626_p12  ;;  %p648_p10 = scmp.lt.s32.totalorder %s646_s21, %s639_s7 }
  0x46   : > { %p643_p11 = pneg %p642_p0  ;;  %p649_p13 = por %p648_p10, %p647_p5 }
  0x48   : > { %p650_p3 = pnand %p649_p13, %p643_p11 }
  0x4a   : > { %653 = shalt.err (!%p650_p3)
}
  0x4b   : > { %535 = dma.hbm_to_vmem [thread:$0]  (!%p890_p2), %s888_s10, 128, %s894_s11, %s170_s19  }
  0x4c   : > { %p1075_p7 = scmp.ne.s32.totalorder %s1070_s24, 0 }
  0x4d   : > { %p1076_p12 = scmp.ne.s32.totalorder (!%p1075_p7), %s1066_s20, 0 }
  0x4e   : > { %192 = sbr.rel (%p1075_p7) target bundleno = 134 (0x86), region = 32 }
  0x55   : > { %707 = dma.done.wait (%p1076_p12), [#allocation5], 64  }
  0x56   : > { %709 = vsyncadd (%p1076_p12), [#allocation5], 4294967232 }
  0x57   : > { %711 = dma.done.wait (%p1076_p12), [#allocation6], 16  }
  0x58   : > { %713 = vsyncadd (%p1076_p12), [#allocation6], 4294967280  ;;  %s932_s18 = sand.u32 1, %s728_s13   ;;  %p1077_p2 = scmp.ne.s32.totalorder %s1068_s22, 0 }
  0x59   : > { %s471_s24 = sshll.u32 %s932_s18, 3  ;;  %s203_s10 = scalar_lea.sflag [#allocation3], %s932_s18 }
  0x5a   : > { %s938_s11 = scalar_lea.vmem [#allocation8], %s471_s24 }
  0x5b   : > { %715 = dma.done.wait (%p1077_p2), %s203_s10, 128  }
  0x5c   : > { %717 = vsyncadd (%p1077_p2), %s203_s10, 4294967168 }
  0x5d   : > { %211 = sfence }
  0x5e   : > { %s233_s20 = sld [smem:[#allocation2]]  ;;  %s474_s19 = sld [smem:[#allocation2 + $0x1]]  ;;  %v232_v0 = vld [vmem:[%s938_s11] ss:$4 sm:$0x3]  ;;  %v257_v15 = vlaneseq }
  0x5f   : > { %s476_s25 = sld [smem:[#allocation2 + $0x2]]  ;;  %s478_s26 = sld [smem:[#allocation2 + $0x3]]  ;;  %v473_v1 = vld [vmem:[%s938_s11 + $0x1] ss:$4 sm:$0x3] }
  0x60   : > { %s946_s4 = sld [smem:[#allocation7]]  ;;  %v475_v3 = vld [vmem:[%s938_s11 + $0x2] ss:$4 sm:$0x3]  ;;  %s481_s22 = sld [smem:[#allocation2 + $0x81]]  ;;  %vm971_vm0 = vcmp.lt.s32.totalorder %v257_v15, 256 }
  0x61   : > { %s479_s5 = sld [smem:[#allocation2 + $0x80]]  ;;  %v477_v6 = vld [vmem:[%s938_s11 + $0x3] ss:$4 sm:$0x3]  ;;  %s483_s27 = sld [smem:[#allocation2 + $0x82]] }
  0x62   : > { %v262_v9 = vld [vmem:[%s938_s11] ss:$4 sm:$0x3]  ;;  %s485_s30 = sld [smem:[#allocation2 + $0x83]]  ;;  %s952_s7 = sld [smem:[#allocation2 + $0x100]] }
  0x63   : > { %v480_v12 = vld [vmem:[%s938_s11 + $0x1] ss:$4 sm:$0x3]  ;;  %s954_s8 = sld [smem:[#allocation7 + $0x1]]  ;;  %s959_s21 = sld [smem:[#allocation2 + $0x102]] }
  0x64   : > { %v234_v2 = vstv %s233_s20  ;;  %v239_v5 = vstv %s474_s19  ;;  %s956_s9 = sld [smem:[#allocation2 + $0x101]]  ;;  %v482_v17 = vld [vmem:[%s938_s11 + $0x2] ss:$4 sm:$0x3]  ;;  %s962_s10 = sld [smem:[#allocation2 + $0x103]] }
  0x65   : > { %v235_v4 = vmul.f32 %v234_v2, %v232_v0  ;;  %v240_v7 = vmul.f32 %v473_v1, %v239_v5  ;;  %v245_v8 = vstv %s476_s25  ;;  %v251_v11 = vstv %s478_s26  ;;  %v484_v21 = vld [vmem:[%s938_s11 + $0x3] ss:$4 sm:$0x3]  ;;  %v286_v25 = vld [vmem:[%s938_s11] ss:$4 sm:$0x3] }
  0x66   : > { %v246_v10 = vmul.f32 %v475_v3, %v245_v8  ;;  %v252_v14 = vmul.f32 %v477_v6, %v251_v11  ;;  %v268_v20 = vstv %s481_s22  ;;  %v255_v22 = vstv %s946_s4  ;;  %v489_v26 = vld [vmem:[%s938_s11 + $0x1] ss:$4 sm:$0x3]  ;;  %s967_s20 = sld [smem:[#allocation7 + $0x2]]  ;;  %s969_s19 = sld [smem:[#allocation2 + $0x180]] }
  0x67   : > { %v241_v13 = vadd.f32 %v240_v7, %v235_v4  ;;  %v264_v16 = vstv %s479_s5  ;;  %v269_v23 = vmul.f32 %v480_v12, %v268_v20  ;;  %v273_v24 = vstv %s483_s27  ;;  %v491_v34 = vld [vmem:[%s938_s11 + $0x2] ss:$4 sm:$0x3]  ;;  %s499_s25 = sld [smem:[#allocation2 + $0x181]]  ;;  %s501_s26 = sld [smem:[#allocation2 + $0x182]] }
  0x68   : > { %v265_v19 = vmul.f32 %v264_v16, %v262_v9  ;;  %v274_v28 = vmul.f32 %v482_v17, %v273_v24  ;;  %v278_v29 = vstv %s485_s30  ;;  %v288_v33 = vstv %s952_s7  ;;  %v493_v38 = vld [vmem:[%s938_s11 + $0x3] ss:$4 sm:$0x3]  ;;  %s503_s4 = sld [smem:[#allocation2 + $0x183]]  ;;  %s982_s5 = scalar_lea.vmem [#allocation9], %s471_s24 }
  0x69   : > { %v247_v18 = vadd.f32 %v246_v10, %v241_v13  ;;  %v279_v32 = vmul.f32 %v484_v21, %v278_v29  ;;  %v289_v36 = vmul.f32 %v288_v33, %v286_v25  ;;  %v297_v41 = vstv %s959_s21  ;;  %v310_v45 = vld [vmem:[%s938_s11] ss:$4 sm:$0x3]  ;;  %v498_v49 = vld [vmem:[%s938_s11 + $0x1] ss:$4 sm:$0x3] }
  0x6a   : > { %v270_v31 = vadd.f32 %v269_v23, %v265_v19  ;;  %v292_v37 = vstv %s956_s9  ;;  %v282_v42 = vstv %s954_s8  ;;  %v298_v43 = vmul.f32 %v491_v34, %v297_v41  ;;  %s504_s22 = sld [smem:[#allocation7 + $0x3]]  ;;  %v500_v51 = vld [vmem:[%s938_s11 + $0x2] ss:$4 sm:$0x3]  ;;  %s512_s24 = sshll.u32 %s736_s15, 7 }
  0x6b   : > { %v253_v27 = vadd.f32 %v252_v14, %v247_v18  ;;  %v293_v40 = vmul.f32 %v489_v26, %v292_v37  ;;  %v302_v44 = vstv %s962_s10  ;;  %v502_v56 = vld [vmem:[%s938_s11 + $0x3] ss:$4 sm:$0x3]  ;;  %s351_s11 = sshll.u32 %s982_s5, 4  ;;  %s1006_s7 = scalar_lea.hbm %s1061_s3, %s512_s24  ;;  %s1008_s11 = int_to_ptr.vmem [resolvable:$true] %s351_s11 }
  0x6c   : > { %v275_v39 = vadd.f32 %v274_v28, %v270_v31  ;;  %v303_v48 = vmul.f32 %v493_v38, %v302_v44  ;;  %v312_v50 = vstv %s969_s19  ;;  %v306_v57 = vstv %s967_s20  ;;  %s335_s8 = scalar_lea.sflag [#allocation4], %s932_s18  ;;  %s654_s9 = scalar_lea.vmem %s1008_s11, 128 }
  0x6d   : > { %v256_v35 = vadd.f32 %v255_v22, %v253_v27  ;;  %v294_v47 = vadd.f32 %v293_v40, %v289_v36  ;;  %v313_v54 = vmul.f32 %v312_v50, %v310_v45  ;;  %v316_v55 = vstv %s499_s25  ;;  %p655_p1 = scmp.ne.s32.totalorder %s1008_s11, %s654_s9  ;;  %s749_s15 = smov [#allocation9]  }
  0x6e   : > { %v280_v46 = vadd.f32 %v279_v32, %v275_v39  ;;  %v317_v58 = vmul.f32 %v498_v49, %v316_v55  ;;  %v321_v59 = vstv %s501_s26  ;;  %v326_v62 = vstv %s503_s4  ;;  %s658_s21 = sshll.u32 %s749_s15, 4  ;;  %s659_s21 = int_to_ptr.vmem [resolvable:$false] %s658_s21 }
  0x6f   : > { %261 = vst.msk [vmem:[%s982_s5] ss:$4 sm:$0x3] %vm971_vm0, %v256_v35  ;;  %v299_v53 = vadd.f32 %v298_v43, %v294_v47  ;;  %v322_v61 = vmul.f32 %v500_v51, %v321_v59  ;;  %v327_v0 = vmul.f32 %v502_v56, %v326_v62  ;;  %p656_p4 = pnand %p655_p1, %p875_p8  ;;  %s660_s10 = scalar_lea.vmem %s659_s21, 256 }
  0x70   : > { %v283_v52 = vadd.f32 %v282_v42, %v280_v46  ;;  %v318_v63 = vadd.f32 %v317_v58, %v313_v54  ;;  %v330_v3 = vstv %s504_s22  ;;  %p661_p9 = scmp.lt.s32.totalorder %s1008_s11, %s659_s21  ;;  %p662_p0 = scmp.lt.s32.totalorder %s660_s10, %s654_s9 }
  0x71   : > { %v304_v60 = vadd.f32 %v303_v48, %v299_v53  ;;  %p657_p6 = pneg %p656_p4 }
  0x72   : > { %487 = vst.msk [vmem:[%s982_s5 + $0x1] ss:$4 sm:$0x3] %vm971_vm0, %v283_v52  ;;  %v323_v2 = vadd.f32 %v322_v61, %v318_v63  ;;  %p663_p11 = por %p662_p0, %p661_p9 }
  0x73   : > { %v307_v1 = vadd.f32 %v306_v57, %v304_v60 }
  0x74   : > { %v328_v4 = vadd.f32 %v327_v0, %v323_v2  ;;  %p664_p5 = pnand %p663_p11, %p657_p6 }
  0x75   : > { %496 = vst.msk [vmem:[%s982_s5 + $0x2] ss:$4 sm:$0x3] %vm971_vm0, %v307_v1 }
  0x76   : > { %v331_v5 = vadd.f32 %v330_v3, %v328_v4 }
  0x78   : > { %505 = vst.msk [vmem:[%s982_s5 + $0x3] ss:$4 sm:$0x3] %vm971_vm0, %v331_v5 }
  0x79   : > { %667 = shalt.err (!%p664_p5)
}
  0x7a   : > { %s668_s18 = scalar_lea.hbm %s1006_s7, 128  ;;  %s672_s25 = scalar_lea.hbm %s1061_s3, 256 }
  0x7b   : > { %p669_p10 = scmp.ne.s32.totalorder %s1006_s7, %s668_s18  ;;  %p673_p7 = scmp.lt.u32.totalorder %s1006_s7, %s1061_s3 }
  0x7c   : > { %p674_p12 = scmp.lt.u32.totalorder %s672_s25, %s668_s18  ;;  %p676_p1 = scmp.lt.u32.totalorder %s668_s18, %s1006_s7 }
  0x7d   : > { %p670_p13 = pnand %p669_p10, %p875_p8 }
  0x7e   : > { %p675_p2 = por %p674_p12, %p673_p7 }
  0x7f   : > { %p671_p3 = pneg %p670_p13 }
  0x80   : > { %p677_p4 = por %p676_p1, %p675_p2 }
  0x82   : > { %p678_p6 = pnand %p677_p4, %p671_p3 }
  0x84   : > { %681 = shalt.err (!%p678_p6)
}
  0x85   : > { %523 = dma.vmem_to_hbm [thread:$0]  (%p875_p8), %s1008_s11, 128, %s1006_s7, %s335_s8  }
  0x86 PF: > { %s363_s5 = sand.u32 1, %s724_s12   ;;  %p1080_p9 = scmp.ne.s32.totalorder %s1069_s23, 0 }
  0x87   : > { %p1081_p0 = scmp.ge.s32.totalorder %s744_s17, 2  ;;  %s364_s22 = scalar_lea.sflag [#allocation4], %s363_s5 }
  0x89   : > { %p537_p11 = pnand %p1081_p0, %p1080_p9 }
  0x8b   : > { %719 = dma.done.wait (!%p537_p11), %s364_s22, 128  }
  0x8c   : > { %721 = vsyncadd (!%p537_p11), %s364_s22, 4294967168  ;;  %s21_s17 = sadd.s32 1, %s744_s17   ;;  %s1082_s12 = smov %s728_s13 }
  0x8d   : > { %p18_p5 = scmp.ge.s32.totalorder %s21_s17, 4   ;;  %s1083_s13 = smov %s732_s14 }
  0x8e   : > { %s1084_s14 = smov %s881_s6  ;;  %s1085_s15 = smov %s740_s16 }
  0x8f   : > { %s1086_s16 = smov %s1088_s29  ;;  %20 = sbr.rel (!%p18_p5) target bundleno = 8 (0x8), region = 93 }
  0x96   :  { %369 = vsyncpa [#allocation3], 1 }
  0x97   :  { %371 = vsyncpa [#allocation3 + $0x1], 1 }
  0x98   :  { %372 = vsyncpa [#allocation4], 1 }
  0x99   :  { %374 = vsyncpa [#allocation4 + $0x1], 1 }
  0x9a   :  { %375 = vsyncpa [#allocation5], 1 }
  0x9b   :  { %377 = vsyncpa [#allocation5 + $0x1], 1 }
  0x9c   :  { %378 = vsyncpa [#allocation6], 1 }
  0x9d   :  { %380 = vsyncpa [#allocation6 + $0x1], 1 }

</bundles_post_ra>
